<compile_context>
chip_gen: v6e
topology: v6e:2x2x1
jax: 0.10.0
libtpu: 0.0.40
codegen_flags: <defaults>
</compile_context>

<pallas_src>
import functools
import math

import jax
import jax.numpy as jnp
from jax.experimental import pallas as pl
from jax.experimental.pallas import tpu as pltpu

NEG_SLOPE = 0.01        # F.leaky_relu default negative slope
MASK_NEG = -1e30        # score/softmax math is always f32, so -1e30 is safe
Z_BLOCK = 128           # per-head z block width (lane-aligned)
ATT_LANES = 128         # lanes holding the folded attention-logit columns
ATT_ROWS_MIN = 8        # sublane quantum for the transposed logit array


def _round_up(x, m):
    return ((x + m - 1) // m) * m


def _vmem_limit_bytes(tile, dz, compute_dtype):
    cb = jnp.dtype(compute_dtype).itemsize
    est = (2 * tile * tile * 1              # int8 adjacency tiles (double-buffered)
           + 2 * tile * dz * cb             # z src tiles
           + 2 * tile * ATT_LANES * 4       # dst logit columns
           + 2 * ATT_ROWS_MIN * tile * 4    # transposed src logit rows
           + 2 * tile * dz * 4              # output tile
           + tile * dz * 4 + 2 * tile * 8)  # f32 accumulator + m/l scratch
    # generous headroom but stay inside v7x's 64 MiB physical VMEM.
    return int(min(max(4 * est, 32 * 1024 * 1024), 48 * 1024 * 1024))


# -----------------------------------------------------------------------------
# Kernel 1: projection.  One row-tile of nodes per grid step.
#   z    = h @ Wz    [rows, H*128]  (head h in its own 128-lane block)
#   att  = h @ Wa    [rows, 128]    (col 2h = a_src.z_h, col 2h+1 = a_dst.z_h)
#   attT = att.T[:8] [8, rows]      (transposed once per layer, src-side rows)
# -----------------------------------------------------------------------------
def _gat_project_kernel(h_ref, wz_ref, wa_ref, z_ref, att_ref, attT_ref, *,
                        att_rows):
    h = h_ref[...]
    z_ref[...] = jnp.dot(h, wz_ref[...],
                         preferred_element_type=jnp.float32).astype(z_ref.dtype)
    att = jnp.dot(h, wa_ref[...], preferred_element_type=jnp.float32)
    att_ref[...] = att
    attT_ref[...] = jnp.transpose(att)[:att_rows, :]


def _project_call(h, wz, wa, *, z_dtype, row_tile, att_rows, vmem_limit):
    n_pad, d_in = h.shape
    dz = wz.shape[1]
    kernel = functools.partial(_gat_project_kernel, att_rows=att_rows)
    return pl.pallas_call(
        kernel,
        out_shape=(
            jax.ShapeDtypeStruct((n_pad, dz), z_dtype),
            jax.ShapeDtypeStruct((n_pad, ATT_LANES), jnp.float32),
            jax.ShapeDtypeStruct((att_rows, n_pad), jnp.float32),
        ),
        grid=(n_pad // row_tile,),
        in_specs=[
            pl.BlockSpec((row_tile, d_in), lambda i: (i, 0)),
            pl.BlockSpec((d_in, dz), lambda i: (0, 0)),
            pl.BlockSpec((d_in, ATT_LANES), lambda i: (0, 0)),
        ],
        out_specs=(
            pl.BlockSpec((row_tile, dz), lambda i: (i, 0)),
            pl.BlockSpec((row_tile, ATT_LANES), lambda i: (i, 0)),
            pl.BlockSpec((att_rows, row_tile), lambda i: (0, i)),
        ),
        compiler_params=pltpu.CompilerParams(
            dimension_semantics=("parallel",),
            vmem_limit_bytes=vmem_limit),
    )(h, wz, wa)


# -----------------------------------------------------------------------------
# Kernel 2: masked-softmax attention, flash-style online softmax over src tiles.
#   grid = (dst tiles ["parallel"], src tiles ["arbitrary"])
# -----------------------------------------------------------------------------
def _gat_attend_kernel(blk_ref, adj_ref, z_ref, attd_ref, attsT_ref, out_ref,
                       m_ref, l_ref, acc_ref, *, num_heads, apply_elu):
    i = pl.program_id(0)
    j = pl.program_id(1)

    @pl.when(j == 0)
    def _init():
        m_ref[...] = jnp.full(m_ref.shape, -jnp.inf, dtype=m_ref.dtype)
        l_ref[...] = jnp.zeros(l_ref.shape, dtype=l_ref.dtype)
        acc_ref[...] = jnp.zeros(acc_ref.shape, dtype=acc_ref.dtype)

    @pl.when(blk_ref[i, j] != 0)          # block-sparsity skip (compute only)
    def _compute():
        mask = adj_ref[...] != 0          # int8 compare, no f32 unpack
        z = z_ref[...]                    # [src_t, H*128], compute dtype
        for h in range(num_heads):        # static unroll over heads
            e_dst = attd_ref[:, 2 * h + 1:2 * h + 2]   # [dst_t, 1]  f32
            e_src = attsT_ref[2 * h:2 * h + 1, :]      # [1, src_t]  f32
            e = e_dst + e_src
            e = jnp.where(e >= 0, e, NEG_SLOPE * e)    # leaky_relu
            e = jnp.where(mask, e, MASK_NEG)
            m_prev = m_ref[h]                          # [dst_t, 1]
            m_new = jnp.maximum(m_prev, jnp.max(e, axis=-1, keepdims=True))
            alpha = jnp.exp(m_prev - m_new)
            p = jnp.exp(e - m_new)                     # masked entries -> exactly 0
            l_ref[h] = alpha * l_ref[h] + jnp.sum(p, axis=-1, keepdims=True)
            sl = slice(h * Z_BLOCK, (h + 1) * Z_BLOCK)
            pv = jnp.dot(p.astype(z.dtype), z[:, sl],
                         preferred_element_type=jnp.float32)
            acc_ref[:, sl] = alpha * acc_ref[:, sl] + pv
            m_ref[h] = m_new

    @pl.when(j == pl.num_programs(1) - 1)
    def _finalize():
        # NOTE: rows whose every block is empty would give l == 0 -> NaN (the
        # reference's 0/0); the driver injects self-loops so this cannot occur.
        for h in range(num_heads):
            sl = slice(h * Z_BLOCK, (h + 1) * Z_BLOCK)
            # normalize AFTER the PV matmul; exact reciprocal (tiny [dst,1]).
            r = acc_ref[:, sl] * pl.reciprocal(l_ref[h], approx=False)
            if apply_elu:                               # fused inter-layer F.elu
                r = jnp.where(r > 0, r, jnp.expm1(r))
            out_ref[:, sl] = r.astype(out_ref.dtype)


def _attend_call(adj_i8, blk_tbl, z, att, attT, *, num_heads, apply_elu,
                 out_dtype, dst_tile, src_tile, vmem_limit):
    n_pad = adj_i8.shape[0]
    dz = z.shape[1]
    att_rows = attT.shape[0]
    kernel = functools.partial(_gat_attend_kernel, num_heads=num_heads,
                               apply_elu=apply_elu)
    grid_spec = pltpu.PrefetchScalarGridSpec(
        num_scalar_prefetch=1,
        grid=(n_pad // dst_tile, n_pad // src_tile),
        in_specs=[
            pl.BlockSpec((dst_tile, src_tile), lambda i, j, tbl: (i, j)),
            pl.BlockSpec((src_tile, dz), lambda i, j, tbl: (j, 0)),
            pl.BlockSpec((dst_tile, ATT_LANES), lambda i, j, tbl: (i, 0)),
            pl.BlockSpec((att_rows, src_tile), lambda i, j, tbl: (0, j)),
        ],
        out_specs=pl.BlockSpec((dst_tile, dz), lambda i, j, tbl: (i, 0)),
        scratch_shapes=[
            pltpu.VMEM((num_heads, dst_tile, 1), jnp.float32),   # running max m
            pltpu.VMEM((num_heads, dst_tile, 1), jnp.float32),   # running sum l
            pltpu.VMEM((dst_tile, dz), jnp.float32),             # f32 accumulator
        ],
    )
    return pl.pallas_call(
        kernel,
        out_shape=jax.ShapeDtypeStruct((n_pad, dz), out_dtype),
        grid_spec=grid_spec,
        compiler_params=pltpu.CompilerParams(
            dimension_semantics=("parallel", "arbitrary"),
            vmem_limit_bytes=vmem_limit),
    )(blk_tbl, adj_i8, z, att, attT)


# -----------------------------------------------------------------------------
# Weight packing: per-head W into lane-aligned 128-wide blocks, attention
# vectors folded into the projection (W @ a_src, W @ a_dst columns).
# -----------------------------------------------------------------------------
def pack_layer_weights(heads):
    """heads: [(W [d_in, d_head], a_src [d_head], a_dst [d_head])] -> (Wz, Wa)."""
    d_in = heads[0][0].shape[0]
    num_heads = len(heads)
    assert 2 * num_heads <= ATT_LANES
    wz = jnp.zeros((d_in, num_heads * Z_BLOCK), jnp.float32)
    wa = jnp.zeros((d_in, ATT_LANES), jnp.float32)
    for h, (w, a_s, a_d) in enumerate(heads):
        d = w.shape[1]
        assert d <= Z_BLOCK
        wz = wz.at[:, h * Z_BLOCK:h * Z_BLOCK + d].set(w)
        wa = wa.at[:, 2 * h].set(w @ a_s)
        wa = wa.at[:, 2 * h + 1].set(w @ a_d)
    return wz, wa


def expand_rows_to_head_blocks(w, d_head, num_heads):
    """Expand [H*d_head, cols] rows to the padded [H*128, cols] layer-1 layout."""
    out = jnp.zeros((num_heads * Z_BLOCK, w.shape[1]), w.dtype)
    for h in range(num_heads):
        out = out.at[h * Z_BLOCK:h * Z_BLOCK + d_head, :].set(
            w[h * d_head:(h + 1) * d_head, :])
    return out


# -----------------------------------------------------------------------------
# Full forward (corrupt=False, use_residual=False).
# -----------------------------------------------------------------------------
def gat_forward_pallas(features, adj, params, *, num_heads, d_hid, d_out,
                       compute_dtype=jnp.bfloat16, tile=256):
    n, d_in = features.shape
    assert d_hid <= Z_BLOCK and d_out <= Z_BLOCK
    att_rows = _round_up(2 * num_heads, ATT_ROWS_MIN)

    # --- pad nodes to a tile multiple; padded rows get a self-loop so their
    #     (discarded) softmax rows stay finite.
    n_pad = _round_up(max(n, tile), tile)
    feat_pad = jnp.zeros((n_pad, d_in), jnp.float32).at[:n].set(features)
    adj_pad = jnp.zeros((n_pad, n_pad), jnp.float32).at[:n, :n].set(adj)
    pad_ids = jnp.arange(n, n_pad)
    adj_pad = adj_pad.at[pad_ids, pad_ids].set(1.0)
    adj_i8 = adj_pad.astype(jnp.int8)          # int8 mask: 4x less DMA than f32

    # --- per-(dst_tile, src_tile) nonzero table for the block-sparsity skip.
    nb = n_pad // tile
    blk_tbl = (adj_i8.astype(jnp.int32)
               .reshape(nb, tile, nb, tile).sum(axis=(1, 3)) > 0).astype(jnp.int32)

    # --- pack weights (host-side, f32 math) then pre-cast to compute_dtype.
    wz1, wa1 = pack_layer_weights(params["layer1"])
    w2, a_s2, a_d2 = params["layer2"][0]
    w2_pad = expand_rows_to_head_blocks(w2, d_hid, num_heads)
    wz2, wa2 = pack_layer_weights([(w2_pad, a_s2, a_d2)])

    cd = compute_dtype
    vmem_limit = _vmem_limit_bytes(tile, max(wz1.shape[1], wz2.shape[1]), cd)

    # ---- layer 1: H heads, merge='cat' (lane-aligned head blocks), fused ELU
    z1, att1, attT1 = _project_call(
        feat_pad.astype(cd), wz1.astype(cd), wa1.astype(cd),
        z_dtype=cd, row_tile=tile, att_rows=att_rows, vmem_limit=vmem_limit)
    h1 = _attend_call(adj_i8, blk_tbl, z1, att1, attT1, num_heads=num_heads,
                      apply_elu=True, out_dtype=cd, dst_tile=tile,
                      src_tile=tile, vmem_limit=vmem_limit)

    # ---- layer 2: single head, f32 output
    z2, att2, attT2 = _project_call(
        h1, wz2.astype(cd), wa2.astype(cd),
        z_dtype=cd, row_tile=tile, att_rows=att_rows, vmem_limit=vmem_limit)
    out = _attend_call(adj_i8, blk_tbl, z2, att2, attT2, num_heads=1,
                       apply_elu=False, out_dtype=jnp.float32, dst_tile=tile,
                       src_tile=tile, vmem_limit=vmem_limit)
    return out[:n, :d_out]


# -----------------------------------------------------------------------------
# Parameter init (deterministic): matches GATLayer.reset_parameters
#   xavier_normal_(weight, gain=calculate_gain('relu')), gain = sqrt(2).
# -----------------------------------------------------------------------------
def _xavier_normal(key, shape, gain):
    fan_out, fan_in = shape                  # torch nn.Linear weight layout
    std = gain * math.sqrt(2.0 / (fan_in + fan_out))
    return std * jax.random.normal(key, shape, dtype=jnp.float32)


def init_head_params(key, in_dim, out_dim):
    gain = math.sqrt(2.0)                    # nn.init.calculate_gain('relu')
    k1, k2 = jax.random.split(key)
    w_t = _xavier_normal(k1, (out_dim, in_dim), gain)     # fc.weight [out, in]
    a = _xavier_normal(k2, (1, 2 * out_dim), gain)        # attn_fc.weight [1, 2*out]
    return jnp.transpose(w_t), a[0, :out_dim], a[0, out_dim:]


def init_gat_params(key, in_dim, hidden_dim, out_dim, num_heads):
    keys = jax.random.split(key, num_heads + 1)
    layer1 = [init_head_params(keys[i], in_dim, hidden_dim) for i in range(num_heads)]
    layer2 = [init_head_params(keys[num_heads], hidden_dim * num_heads, out_dim)]
    return {"layer1": layer1, "layer2": layer2}


# -----------------------------------------------------------------------------
# Pure-JAX reference (exact module semantics: per-head, unfolded, f32).
# -----------------------------------------------------------------------------
def gat_forward_ref(features, adj, params):
    mask = adj != 0.0
    hp = jax.lax.Precision.HIGHEST

    def head(h, w, a_s, a_d):
        z = jnp.dot(h, w, precision=hp)
        e = jnp.dot(z, a_d, precision=hp)[:, None] + jnp.dot(z, a_s, precision=hp)[None, :]
        e = jnp.where(e >= 0, e, NEG_SLOPE * e)
        e = jnp.where(mask, e, MASK_NEG)
        e = e - jnp.max(e, axis=-1, keepdims=True)
        p = jnp.exp(e)
        alpha = p / jnp.sum(p, axis=-1, keepdims=True)
        return jnp.dot(alpha, z, precision=hp)

    h1 = jnp.concatenate(
        [head(features, w, a_s, a_d) for (w, a_s, a_d) in params["layer1"]], axis=1)
    h1 = jnp.where(h1 > 0, h1, jnp.expm1(h1))            # F.elu
    w2, a_s2, a_d2 = params["layer2"][0]
    return head(h1, w2, a_s2, a_d2)


if __name__ == "__main__":
    # Small but multi-tile config: TILE=128 at N=384 gives a (3, 3) attention
    # grid, exercising online-softmax accumulation across src tiles, the
    # parallel dst axis, and the empty-block skip (band-sparse adjacency).
    N, in_dim, hidden_dim, out_dim, num_heads = 384, 32, 16, 8, 2
    TILE = 128   # demo tile; ~256 on v7x (64 MiB VMEM), 512+ on v5e/v6e

    key = jax.random.PRNGKey(0)
    k_feat, k_adj, k_param = jax.random.split(key, 3)

    features = jax.random.normal(k_feat, (N, in_dim), dtype=jnp.float32)
    adj = (jax.random.uniform(k_adj, (N, N)) < 0.05).astype(jnp.float32)
    blk_id = jnp.arange(N) // TILE
    band = (jnp.abs(blk_id[:, None] - blk_id[None, :]) <= 1).astype(jnp.float32)
    adj = adj * band                                          # block-sparse graph
    adj = jnp.maximum(adj, jnp.eye(N, dtype=jnp.float32))     # self-loops

    # TODO(synk): corrupt=True (torch.randperm feature shuffle) and the DGL
    # NodeFlow layer-sampling bookkeeping have no dense-kernel equivalent here.
    params = init_gat_params(k_param, in_dim, hidden_dim, out_dim, num_heads)

    run = functools.partial(gat_forward_pallas, features, adj, params,
                            num_heads=num_heads, d_hid=hidden_dim,
                            d_out=out_dim, tile=TILE)

    # f32-compute path vs. pure-JAX reference (exact module semantics).
    out_f32 = jax.block_until_ready(run(compute_dtype=jnp.float32))
    ref = gat_forward_ref(features, adj, params)
    assert out_f32.shape == (N, out_dim), out_f32.shape
    err = float(jnp.abs(out_f32 - ref).max())
    assert jnp.allclose(out_f32, ref, atol=2e-2, rtol=2e-2), err

    # bf16 fast path (bf16 MXU operands are full-rate on v5e/v6e/v7x; all
    # softmax / leaky_relu / ELU math stays f32).
    out_bf16 = jax.block_until_ready(run(compute_dtype=jnp.bfloat16))
    assert out_bf16.shape == (N, out_dim), out_bf16.shape
    assert bool(jnp.all(jnp.isfinite(out_bf16)))

    print("KERNEL_OK")
</pallas_src>

<mosaic_0001>
module attributes {stable_mosaic.version = 11 : i64} {
  func.func @_gat_project_kernel(%arg0: i32, %arg1: memref<128x32xf32, #tpu.memory_space<vmem>>, %arg2: memref<32x256xf32, #tpu.memory_space<vmem>>, %arg3: memref<32x128xf32, #tpu.memory_space<vmem>>, %arg4: memref<128x256xf32, #tpu.memory_space<vmem>>, %arg5: memref<128x128xf32, #tpu.memory_space<vmem>>, %arg6: memref<8x128xf32, #tpu.memory_space<vmem>>) attributes {dimension_semantics = [#tpu.dimension_semantics<parallel>], iteration_bounds = array<i64: 3>, scalar_prefetch = 0 : i64, scratch_operands = 0 : i64, tpu.core_type = #tpu.core_type<tc>, window_params = [{transform_indices = @transform_0, window_bounds = array<i64: 128, 32>}, {pipeline_mode = #tpu.pipeline_mode<synchronous>, transform_indices = @transform_1, window_bounds = array<i64: 32, 256>}, {pipeline_mode = #tpu.pipeline_mode<synchronous>, transform_indices = @transform_2, window_bounds = array<i64: 32, 128>}, {transform_indices = @transform_3, window_bounds = array<i64: 128, 256>}, {transform_indices = @transform_4, window_bounds = array<i64: 128, 128>}, {transform_indices = @transform_5, window_bounds = array<i64: 8, 128>}]} {
    %c0 = arith.constant 0 : index
    %c0_0 = arith.constant 0 : index
    %0 = vector.load %arg1[%c0, %c0_0] : memref<128x32xf32, #tpu.memory_space<vmem>>, vector<128x32xf32>
    %c0_1 = arith.constant 0 : index
    %c0_2 = arith.constant 0 : index
    %1 = vector.load %arg2[%c0_1, %c0_2] : memref<32x256xf32, #tpu.memory_space<vmem>>, vector<32x256xf32>
    %cst = arith.constant dense<0.000000e+00> : vector<128x256xf32>
    %2 = tpu.matmul %0, %1, %cst {dimension_numbers = #tpu.dot_dimension_numbers<[1], [0], [0], [1], [0, 0, 1, 1], [], []>} : vector<128x32xf32>, vector<32x256xf32>, vector<128x256xf32> -> vector<128x256xf32>
    %c0_3 = arith.constant 0 : index
    %c0_4 = arith.constant 0 : index
    %3 = vector.load %arg4[%c0_3, %c0_4] : memref<128x256xf32, #tpu.memory_space<vmem>>, vector<128x256xf32>
    tpu.vector_store %arg4[%c0_3, %c0_4], %2 {strides = array<i32>} : memref<128x256xf32, #tpu.memory_space<vmem>>, vector<128x256xf32>,
    %c0_5 = arith.constant 0 : index
    %c0_6 = arith.constant 0 : index
    %4 = vector.load %arg3[%c0_5, %c0_6] : memref<32x128xf32, #tpu.memory_space<vmem>>, vector<32x128xf32>
    %cst_7 = arith.constant dense<0.000000e+00> : vector<128x128xf32>
    %5 = tpu.matmul %0, %4, %cst_7 {dimension_numbers = #tpu.dot_dimension_numbers<[1], [0], [0], [1], [0, 0, 1, 1], [], []>} : vector<128x32xf32>, vector<32x128xf32>, vector<128x128xf32> -> vector<128x128xf32>
    %c0_8 = arith.constant 0 : index
    %c0_9 = arith.constant 0 : index
    %6 = vector.load %arg5[%c0_8, %c0_9] : memref<128x128xf32, #tpu.memory_space<vmem>>, vector<128x128xf32>
    tpu.vector_store %arg5[%c0_8, %c0_9], %5 {strides = array<i32>} : memref<128x128xf32, #tpu.memory_space<vmem>>, vector<128x128xf32>,
    %7 = tpu.transpose %5, [1, 0] : vector<128x128xf32> -> vector<128x128xf32>
    %8 = vector.extract_strided_slice %7 {offsets = [0, 0], sizes = [8, 128], strides = [1, 1]} : vector<128x128xf32> to vector<8x128xf32>
    %c0_10 = arith.constant 0 : index
    %c0_11 = arith.constant 0 : index
    %9 = vector.load %arg6[%c0_10, %c0_11] : memref<8x128xf32, #tpu.memory_space<vmem>>, vector<8x128xf32>
    tpu.vector_store %arg6[%c0_10, %c0_11], %8 {strides = array<i32>} : memref<8x128xf32, #tpu.memory_space<vmem>>, vector<8x128xf32>,
    return
  }
  func.func @transform_0(%arg0: i32) -> (i32, i32) {
    %c0_i32 = arith.constant 0 : i32
    %c0_i32_0 = arith.constant 0 : i32
    return %arg0, %c0_i32 : i32, i32
  }
  func.func @transform_1(%arg0: i32) -> (i32, i32) {
    %c0_i32 = arith.constant 0 : i32
    %c0_i32_0 = arith.constant 0 : i32
    %c0_i32_1 = arith.constant 0 : i32
    return %c0_i32, %c0_i32_0 : i32, i32
  }
  func.func @transform_2(%arg0: i32) -> (i32, i32) {
    %c0_i32 = arith.constant 0 : i32
    %c0_i32_0 = arith.constant 0 : i32
    %c0_i32_1 = arith.constant 0 : i32
    return %c0_i32, %c0_i32_0 : i32, i32
  }
  func.func @transform_3(%arg0: i32) -> (i32, i32) {
    %c0_i32 = arith.constant 0 : i32
    %c0_i32_0 = arith.constant 0 : i32
    return %arg0, %c0_i32 : i32, i32
  }
  func.func @transform_4(%arg0: i32) -> (i32, i32) {
    %c0_i32 = arith.constant 0 : i32
    %c0_i32_0 = arith.constant 0 : i32
    return %arg0, %c0_i32 : i32, i32
  }
  func.func @transform_5(%arg0: i32) -> (i32, i32) {
    %c0_i32 = arith.constant 0 : i32
    %c0_i32_0 = arith.constant 0 : i32
    return %c0_i32, %arg0 : i32, i32
  }
}

</mosaic_0001>

<bundles_post_ra>
// kernel: tpu_custom_call.1
= control target key start
LH: loop header
LB: loop body
LE: loop exit
PB: predicated region body
PF: predicated region fallthrough
CT: control target
= control target key end

     0   :  { %11 = vsyncpa [#allocation3], 0  ;;  %s1566_s0 = inlined_call_operand.vmem [shape: f32[384,32], index: 0, kind: input, shape index: {}]   ;;  %s1567_s1 = inlined_call_operand.vmem [shape: f32[32,256], index: 1, kind: input, shape index: {}]   ;;  %s1568_s2 = inlined_call_operand.vmem [shape: f32[32,128], index: 2, kind: input, shape index: {}]   ;;  %s1569_s3 = inlined_call_operand.hbm [shape: f32[384,256], index: 3, kind: output, shape index: {0}]   ;;  %s1570_s4 = inlined_call_operand.hbm [shape: f32[384,128], index: 4, kind: output, shape index: {1}]   ;;  %s1571_s5 = inlined_call_operand.hbm [shape: f32[8,384], index: 5, kind: output, shape index: {2}]  }
   0x1   :  { %13 = vsyncpa [#allocation3 + $0x1], 0 }
   0x2   :  { %14 = vsyncpa [#allocation5], 0 }
   0x3   :  { %16 = vsyncpa [#allocation5 + $0x1], 0  ;;  %s1211_s18 = smov 0   ;;  %s1213_s19 = smov 0  }
   0x4   :  { %s1215_s20 = smov 0   ;;  %s1217_s21 = smov 0  }
   0x5 LB: > { %s1232_s22 = sadd.s32 4294967295, %s1171_s21   ;;  %s1572_s23 = sadd.s32 4294967294, %s1171_s21   ;;  %s1171_s21 = sphi %s1217_s21, %s1579_s21   ;;  %s1167_s20 = sphi %s1215_s20, %s1578_s20   ;;  %s1163_s19 = sphi %s1213_s19, %s1577_s19   ;;  %s1159_s18 = sphi %s1211_s18, %s1576_s18  }
   0x6   : > { %s1236_s24 = sadd.s32 1, %s1171_s21   ;;  %s97_s25 = sadd.s32 1, %s1167_s20 }
   0x7   : > { %s94_s26 = ssub.s32 %s1171_s21, %s1236_s24  ;;  %p107_p0 = scmp.ne.s32.totalorder %s1167_s20, %s1163_s19 }
   0x8   : > { %p95_p1 = scmp.eq.s32.totalorder %s94_s26, 0  ;;  %p108_p2 = scmp.eq.s32.totalorder %s1232_s22, 2 }
   0x9   : > { %p113_p3 = scmp.ne.s32.totalorder %s1163_s19, %s1159_s18  ;;  %p114_p4 = scmp.eq.s32.totalorder %s1572_s23, 2 }
   0xa   : > { %s1249_s27 = scalar_select %p95_p1, %s1167_s20, %s97_s25  }
   0xb   : > { %p1251_p5 = por %p108_p2, %p107_p0  ;;  %p1255_p6 = por %p114_p4, %p113_p3 }
   0xc   : > { %p889_p7 = scmp.ge.s32.totalorder %s1171_s21, 1  ;;  %p199_p8 = scmp.lt.s32.totalorder %s1171_s21, 4 }
   0xe   : > { %p200_p9 = pnand %p889_p7, %p199_p8 }
   0xf   : > { %s893_s11 = sshll.u32 (!%p200_p9), %s1232_s22, 4  ;;  %s1372_s26 = sand.u32 (!%p200_p9), 1, %s1163_s19  }
  0x10   : > { %203 = sbr.rel (%p200_p9) target bundleno = 407 (0x197), region = 32  ;;  %p238_p10 = scmp.lt.s32.totalorder (!%p200_p9), %s893_s11, 47 }
  0x11   : > { %s890_s30 = sshll.u32 (!%p200_p9), %s1372_s26, 8  ;;  %s714_s9 = sand.u32 (!%p200_p9), 1, %s1232_s22  }
  0x12   : > { %s1375_s6 = scalar_lea.vmem (!%p200_p9), [#allocation2], %s890_s30  ;;  %s939_s15 = sshll.u32 (!%p200_p9), %s1232_s22, 12 }
  0x13   : > { %s734_s16 = sshll.u32 (!%p200_p9), %s1375_s6, 4  ;;  %s1461_s17 = scalar_lea.sflag (!%p200_p9), [#allocation5], %s714_s9  ;;  %s1494_s16 = int_to_ptr.vmem [resolvable:$true] %s734_s16 }
  0x14   : > { %s1174_s30 = smov (!%p200_p9), [#allocation4]  }
  0x15   : > { %v268_v0 = vld [vmem:[%s1567_s1 + $0x38] sm:$0xff]  ;;  %v267_v1 = vld [vmem:[%s1567_s1 + $0x30] sm:$0xff]  ;;  %v266_v2 = vld [vmem:[%s1567_s1 + $0x28] sm:$0xff]  ;;  %v1173_v4 = vmov 0.0   ;;  %s1581_s11 = smov (!%p238_p10, %s893_s11), 47  ;;  %vm269_vm0 = vcmask 261120  }
  0x16   : > { %993 = vmatprep.subr.mxu1 %v268_v0  ;;  %v265_v3 = vld [vmem:[%s1567_s1 + $0x20] sm:$0xff]  ;;  %454 = vmatprep.mubr.f32.mxu1 %v1173_v4  ;;  %v264_v5 = vld [vmem:[%s1567_s1 + $0x18] sm:$0xff]  ;;  %v263_v6 = vld [vmem:[%s1567_s1 + $0x10] sm:$0xff]  ;;  %s894_s7 = sshll.u32 %s1581_s11, 3 }
  0x17   : > { %997 = vmatpush1.msra.mxu1 %v267_v1  ;;  %342 = vmatprep.subr.mxu0 %v268_v0  ;;  %v262_v7 = vld [vmem:[%s1567_s1 + $0x8] sm:$0xff]  ;;  %v261_v8 = vld [vmem:[%s1567_s1] sm:$0xff]  ;;  %s1290_s10 = scalar_lea.vmem %s1566_s0, %s894_s7  ;;  %v514_v9 = vld [vmem:[%s1568_s2 + $0x18] sm:$0xff]  ;;  %s891_s7 = sshll.u32 %s1372_s26, 7 }
  0x18   : > { %994 = vmatprep.subr.mxu1 %v266_v2  ;;  %343 = vmatpush1.msra.mxu0 %v267_v1  ;;  %v1296_v10 = vld [vmem:[%s1290_s10 + $0x60] sm:$0xff]  ;;  %v513_v11 = vld [vmem:[%s1568_s2 + $0x10] sm:$0xff]  ;;  %v258_v12 = vld [vmem:[%s1290_s10 + $0x68] sm:$0xff]  ;;  %s1391_s8 = scalar_lea.vmem [#allocation4], %s891_s7  ;;  %s1059_s7 = sshll.u32 %s1174_s30, 4  ;;  %s1060_s7 = int_to_ptr.vmem [resolvable:$false] %s1059_s7 }
  0x19   : > { %998 = vmatpush1.msra.mxu1 %v265_v3  ;;  %344 = vmatprep.subr.mxu0 %v266_v2  ;;  %v512_v13 = vld [vmem:[%s1568_s2 + $0x8] sm:$0xff]  ;;  %v511_v14 = vld [vmem:[%s1568_s2] sm:$0xff]  ;;  %v259_v15 = vld [vmem:[%s1290_s10 + $0x70] sm:$0xff]  ;;  %s750_s12 = sshll.u32 %s1391_s8, 4  ;;  %s1452_s12 = int_to_ptr.vmem [resolvable:$true] %s750_s12 }
  0x1a   : > { %995 = vmatprep.subr.mxu1 %v264_v5  ;;  %345 = vmatpush1.msra.mxu0 %v265_v3  ;;  %v245_v16 = vld [vmem:[%s1290_s10] sm:$0xff]  ;;  %v260_v17 = vld [vmem:[%s1290_s10 + $0x78] sm:$0xff]  ;;  %v246_v18 = vld [vmem:[%s1290_s10 + $0x8] sm:$0xff]  ;;  %s1055_s25 = scalar_lea.vmem %s1452_s12, 2048  ;;  %p1062_p0 = scmp.lt.s32.totalorder %s1452_s12, %s1060_s7 }
  0x1b   : > { %999 = vmatpush1.msra.mxu1 %v263_v6  ;;  %346 = vmatprep.subr.mxu0 %v264_v5  ;;  %v247_v19 = vld [vmem:[%s1290_s10 + $0x10] sm:$0xff]  ;;  %v248_v20 = vld [vmem:[%s1290_s10 + $0x18] sm:$0xff]  ;;  %v249_v21 = vld [vmem:[%s1290_s10 + $0x20] sm:$0xff]  ;;  %p1056_p11 = scmp.ne.s32.totalorder %s1452_s12, %s1055_s25 }
  0x1c   : > { %996 = vmatprep.subr.mxu1 %v262_v7  ;;  %347 = vmatpush1.msra.mxu0 %v263_v6  ;;  %v250_v22 = vld [vmem:[%s1290_s10 + $0x28] sm:$0xff]  ;;  %v251_v23 = vld [vmem:[%s1290_s10 + $0x30] sm:$0xff]  ;;  %v252_v24 = vld [vmem:[%s1290_s10 + $0x38] sm:$0xff] }
  0x1d   : > { %1000 = vmatpush1.msra.mxu1 %v261_v8  ;;  %348 = vmatprep.subr.mxu0 %v262_v7  ;;  %v253_v25 = vld [vmem:[%s1290_s10 + $0x40] sm:$0xff]  ;;  %v254_v26 = vld [vmem:[%s1290_s10 + $0x48] sm:$0xff]  ;;  %v255_v27 = vld [vmem:[%s1290_s10 + $0x50] sm:$0xff]  ;;  %p1057_p12 = pnand %p1056_p11, %p1251_p5 }
  0x1e   : > { %907 = vmatmul.mubr.msk.f32.vlgmr.msra.gmra.mxu1 %vm269_vm0, %v1296_v10  ;;  %961 = vmatprep.subr.mxu1 %v514_v9  ;;  %v256_v28 = vld [vmem:[%s1290_s10 + $0x58] sm:$0xff]  ;;  %s940_s10 = sshll.u32 %s1232_s22, 11 }
  0x1f   : > { %962 = vmatpush3.msra.mxu1 %v514_v9  ;;  %460 = vmatprep.mubr.f32.mxu1 %v1173_v4  ;;  %s1447_s14 = scalar_lea.hbm %s1570_s4, %s940_s10  ;;  %p1058_p13 = pneg %p1057_p12 }
  0x20   : > { %963 = vmatprep.subr.mxu1 %v513_v11  ;;  %349 = vmatpush1.msra.mxu0 %v261_v8  ;;  %s1061_s10 = scalar_lea.vmem %s1060_s7, 4096 }
  0x21   : > { %964 = vmatpush3.msra.mxu1 %v513_v11  ;;  %382 = vmatprep.mubr.f32.mxu0 %v1173_v4  ;;  %p1063_p1 = scmp.lt.s32.totalorder %s1061_s10, %s1055_s25 }
  0x22   : > { %908 = vmatmul.mubr.msk.f32.gmra.mxu1 %vm269_vm0, %v258_v12  ;;  %965 = vmatprep.subr.mxu1 %v512_v13 }
  0x23   : > { %466 = vmatprep.mubr.f32.mxu1 %v1173_v4  ;;  %966 = vmatpush3.msra.mxu1 %v512_v13  ;;  %p1064_p2 = por %p1063_p1, %p1062_p0 }
  0x24   : > { %967 = vmatprep.subr.mxu1 %v511_v14  ;;  %895 = vmatmul.mubr.msk.f32.vlgmr.msra.gmra.mxu0 %vm269_vm0, %v245_v16 }
  0x25   : > { %968 = vmatpush3.msra.mxu1 %v511_v14  ;;  %388 = vmatprep.mubr.f32.mxu0 %v1173_v4  ;;  %p1065_p3 = pnand %p1064_p2, %p1058_p13 }
  0x26   : > { %909 = vmatmul.mubr.msk.f32.gmra.mxu1 %vm269_vm0, %v259_v15 }
  0x27   : > { %472 = vmatprep.mubr.f32.mxu1 %v1173_v4 }
  0x28   : > { %896 = vmatmul.mubr.msk.f32.gmra.mxu0 %vm269_vm0, %v246_v18 }
  0x29   : > { %394 = vmatprep.mubr.f32.mxu0 %v1173_v4 }
  0x2a   : > { %910 = vmatmul.mubr.msk.f32.gmra.mxu1 %vm269_vm0, %v260_v17 }
  0x2b   : > { %969 = vmatprep.mubr.msk.f32.mxu1 %vm269_vm0, %v245_v16 }
  0x2c   : > { %897 = vmatmul.mubr.msk.f32.gmra.mxu0 %vm269_vm0, %v247_v19 }
  0x2d   : > { %400 = vmatprep.mubr.f32.mxu0 %v1173_v4 }
  0x2e   : > { %970 = vmatmul.mubr.msk.f32.vlgmr.msra.gmra.mxu1 %vm269_vm0, %v246_v18 }
  0x2f   : > { %972 = vmatprep.mubr.msk.f32.mxu1 %vm269_vm0, %v247_v19 }
  0x30   : > { %898 = vmatmul.mubr.msk.f32.gmra.mxu0 %vm269_vm0, %v248_v20 }
  0x31   : > { %406 = vmatprep.mubr.f32.mxu0 %v1173_v4 }
  0x32   : > { %973 = vmatmul.mubr.msk.f32.gmra.mxu1 %vm269_vm0, %v248_v20 }
  0x33   : > { %975 = vmatprep.mubr.msk.f32.mxu1 %vm269_vm0, %v249_v21 }
  0x34   : > { %899 = vmatmul.mubr.msk.f32.gmra.mxu0 %vm269_vm0, %v249_v21 }
  0x35   : > { %412 = vmatprep.mubr.f32.mxu0 %v1173_v4 }
  0x36   : > { %976 = vmatmul.mubr.msk.f32.gmra.mxu1 %vm269_vm0, %v250_v22 }
  0x37   : > { %978 = vmatprep.mubr.msk.f32.mxu1 %vm269_vm0, %v251_v23 }
  0x38   : > { %900 = vmatmul.mubr.msk.f32.gmra.mxu0 %vm269_vm0, %v250_v22 }
  0x39   : > { %418 = vmatprep.mubr.f32.mxu0 %v1173_v4 }
  0x3a   : > { %979 = vmatmul.mubr.msk.f32.gmra.mxu1 %vm269_vm0, %v252_v24 }
  0x3b   : > { %981 = vmatprep.mubr.msk.f32.mxu1 %vm269_vm0, %v253_v25 }
  0x3c   : > { %901 = vmatmul.mubr.msk.f32.gmra.mxu0 %vm269_vm0, %v251_v23 }
  0x3d   : > { %424 = vmatprep.mubr.f32.mxu0 %v1173_v4 }
  0x3e   : > { %982 = vmatmul.mubr.msk.f32.gmra.mxu1 %vm269_vm0, %v254_v26 }
  0x3f   : > { %984 = vmatprep.mubr.msk.f32.mxu1 %vm269_vm0, %v255_v27 }
  0x40   : > { %902 = vmatmul.mubr.msk.f32.gmra.mxu0 %vm269_vm0, %v252_v24 }
  0x41   : > { %430 = vmatprep.mubr.f32.mxu0 %v1173_v4 }
  0x42   : > { %985 = vmatmul.mubr.msk.f32.gmra.mxu1 %vm269_vm0, %v256_v28 }
  0x43   : > { %987 = vmatprep.mubr.msk.f32.mxu1 %vm269_vm0, %v1296_v10 }
  0x44   : > { %903 = vmatmul.mubr.msk.f32.gmra.mxu0 %vm269_vm0, %v253_v25 }
  0x45   : > { %436 = vmatprep.mubr.f32.mxu0 %v1173_v4 }
  0x46   : > { %988 = vmatmul.mubr.msk.f32.gmra.mxu1 %vm269_vm0, %v258_v12 }
  0x47   : > { %990 = vmatprep.mubr.msk.f32.mxu1 %vm269_vm0, %v259_v15 }
  0x48   : > { %904 = vmatmul.mubr.msk.f32.gmra.mxu0 %vm269_vm0, %v254_v26 }
  0x49   : > { %442 = vmatprep.mubr.f32.mxu0 %v1173_v4 }
  0x4a   : > { %991 = vmatmul.mubr.msk.f32.gmra.mxu1 %vm269_vm0, %v260_v17 }
  0x4c   : > { %905 = vmatmul.mubr.msk.f32.gmra.mxu0 %vm269_vm0, %v255_v27 }
  0x4d   : > { %448 = vmatprep.mubr.f32.mxu0 %v1173_v4 }
  0x50   : > { %906 = vmatmul.mubr.msk.f32.gmra.mxu0 %vm269_vm0, %v256_v28 }
  0xde   : > { %v456_v29 = vpop.f32.mrf.mxu1 }
  0xdf   : > { %503 = vst [vmem:[%s1375_s6 + $0xc0] sm:$0xff] %v456_v29 }
  0xe0   : > { %v458_v30 = vpop.f32.mrf.mxu1 }
  0xe1   : > { %504 = vst [vmem:[%s1375_s6 + $0xc8] sm:$0xff] %v458_v30 }
  0xe2   : > { %v462_v31 = vpop.f32.mrf.mxu1 }
  0xe3   : > { %505 = vst [vmem:[%s1375_s6 + $0xd0] sm:$0xff] %v462_v31 }
  0xe4   : > { %v464_v32 = vpop.f32.mrf.mxu1  ;;  %v384_v33 = vpop.f32.mrf.mxu0 }
  0xe5   : > { %506 = vst [vmem:[%s1375_s6 + $0xd8] sm:$0xff] %v464_v32  ;;  %479 = vst [vmem:[%s1375_s6] sm:$0xff] %v384_v33 }
  0xe6   : > { %v468_v34 = vpop.f32.mrf.mxu1  ;;  %v386_v35 = vpop.f32.mrf.mxu0 }
  0xe7   : > { %507 = vst [vmem:[%s1375_s6 + $0xe0] sm:$0xff] %v468_v34  ;;  %480 = vst [vmem:[%s1375_s6 + $0x8] sm:$0xff] %v386_v35 }
  0xe8   : > { %v470_v36 = vpop.f32.mrf.mxu1  ;;  %v390_v37 = vpop.f32.mrf.mxu0 }
  0xe9   : > { %508 = vst [vmem:[%s1375_s6 + $0xe8] sm:$0xff] %v470_v36  ;;  %481 = vst [vmem:[%s1375_s6 + $0x10] sm:$0xff] %v390_v37 }
  0xea   : > { %v474_v38 = vpop.f32.mrf.mxu1  ;;  %v392_v39 = vpop.f32.mrf.mxu0 }
  0xeb   : > { %509 = vst [vmem:[%s1375_s6 + $0xf0] sm:$0xff] %v474_v38  ;;  %482 = vst [vmem:[%s1375_s6 + $0x18] sm:$0xff] %v392_v39 }
  0xec   : > { %v476_v40 = vpop.f32.mrf.mxu1  ;;  %v396_v41 = vpop.f32.mrf.mxu0 }
  0xed   : > { %510 = vst [vmem:[%s1375_s6 + $0xf8] sm:$0xff] %v476_v40  ;;  %483 = vst [vmem:[%s1375_s6 + $0x20] sm:$0xff] %v396_v41 }
  0xee   : > { %v971_v42 = vpop.f32.mrf.mxu1  ;;  %v398_v43 = vpop.f32.mrf.mxu0 }
  0xef   : > { %661 = vst [vmem:[%s1391_s8 + $0x8] sm:$0xff] %v971_v42  ;;  %484 = vst [vmem:[%s1375_s6 + $0x28] sm:$0xff] %v398_v43 }
  0xf0   : > { %v581_v44 = vpop.f32.mrf.mxu1  ;;  %v402_v45 = vpop.f32.mrf.mxu0 }
  0xf1   : > { %660 = vst [vmem:[%s1391_s8] sm:$0xff] %v581_v44  ;;  %676 = vxpose.xlu0.b32.start [1/16] (narrow) %v581_v44, 8  ;;  %485 = vst [vmem:[%s1375_s6 + $0x30] sm:$0xff] %v402_v45 }
  0xf2   : > { %v974_v46 = vpop.f32.mrf.mxu1  ;;  %v404_v47 = vpop.f32.mrf.mxu0 }
  0xf3   : > { %663 = vst [vmem:[%s1391_s8 + $0x18] sm:$0xff] %v974_v46  ;;  %486 = vst [vmem:[%s1375_s6 + $0x38] sm:$0xff] %v404_v47 }
  0xf4   : > { %v591_v48 = vpop.f32.mrf.mxu1  ;;  %v408_v49 = vpop.f32.mrf.mxu0 }
  0xf5   : > { %677 = vxpose.xlu0.b32.cont [2/16] (narrow) %v971_v42, 8  ;;  %662 = vst [vmem:[%s1391_s8 + $0x10] sm:$0xff] %v591_v48  ;;  %487 = vst [vmem:[%s1375_s6 + $0x40] sm:$0xff] %v408_v49 }
  0xf6   : > { %v977_v50 = vpop.f32.mrf.mxu1  ;;  %v410_v51 = vpop.f32.mrf.mxu0 }
  0xf7   : > { %665 = vst [vmem:[%s1391_s8 + $0x28] sm:$0xff] %v977_v50  ;;  %488 = vst [vmem:[%s1375_s6 + $0x48] sm:$0xff] %v410_v51 }
  0xf8   : > { %v601_v52 = vpop.f32.mrf.mxu1  ;;  %v414_v53 = vpop.f32.mrf.mxu0 }
  0xf9   : > { %678 = vxpose.xlu0.b32.cont [3/16] (narrow) %v591_v48, 8  ;;  %664 = vst [vmem:[%s1391_s8 + $0x20] sm:$0xff] %v601_v52  ;;  %489 = vst [vmem:[%s1375_s6 + $0x50] sm:$0xff] %v414_v53 }
  0xfa   : > { %v980_v54 = vpop.f32.mrf.mxu1  ;;  %v416_v55 = vpop.f32.mrf.mxu0 }
  0xfb   : > { %667 = vst [vmem:[%s1391_s8 + $0x38] sm:$0xff] %v980_v54  ;;  %490 = vst [vmem:[%s1375_s6 + $0x58] sm:$0xff] %v416_v55 }
  0xfc   : > { %v611_v56 = vpop.f32.mrf.mxu1  ;;  %v420_v57 = vpop.f32.mrf.mxu0 }
  0xfd   : > { %679 = vxpose.xlu0.b32.cont [4/16] (narrow) %v974_v46, 8  ;;  %666 = vst [vmem:[%s1391_s8 + $0x30] sm:$0xff] %v611_v56  ;;  %491 = vst [vmem:[%s1375_s6 + $0x60] sm:$0xff] %v420_v57 }
  0xfe   : > { %v1409_v58 = vpop.f32.mrf.mxu1  ;;  %v422_v59 = vpop.f32.mrf.mxu0 }
  0xff   : > { %669 = vst [vmem:[%s1391_s8 + $0x48] sm:$0xff] %v1409_v58  ;;  %492 = vst [vmem:[%s1375_s6 + $0x68] sm:$0xff] %v422_v59 }
 0x100   : > { %v1414_v60 = vpop.f32.mrf.mxu1  ;;  %v426_v61 = vpop.f32.mrf.mxu0 }
 0x101   : > { %680 = vxpose.xlu0.b32.cont [5/16] (narrow) %v601_v52, 8  ;;  %668 = vst [vmem:[%s1391_s8 + $0x40] sm:$0xff] %v1414_v60  ;;  %493 = vst [vmem:[%s1375_s6 + $0x70] sm:$0xff] %v426_v61 }
 0x102   : > { %v1419_v62 = vpop.f32.mrf.mxu1  ;;  %v428_v63 = vpop.f32.mrf.mxu0 }
 0x103   : > { %671 = vst [vmem:[%s1391_s8 + $0x58] sm:$0xff] %v1419_v62  ;;  %494 = vst [vmem:[%s1375_s6 + $0x78] sm:$0xff] %v428_v63 }
 0x104   : > { %v1424_v0 = vpop.f32.mrf.mxu1  ;;  %v432_v1 = vpop.f32.mrf.mxu0 }
 0x105   : > { %681 = vxpose.xlu0.b32.cont [6/16] (narrow) %v977_v50, 8  ;;  %670 = vst [vmem:[%s1391_s8 + $0x50] sm:$0xff] %v1424_v0  ;;  %495 = vst [vmem:[%s1375_s6 + $0x80] sm:$0xff] %v432_v1 }
 0x106   : > { %v1429_v2 = vpop.f32.mrf.mxu1  ;;  %v434_v3 = vpop.f32.mrf.mxu0 }
 0x107   : > { %673 = vst [vmem:[%s1391_s8 + $0x68] sm:$0xff] %v1429_v2  ;;  %496 = vst [vmem:[%s1375_s6 + $0x88] sm:$0xff] %v434_v3 }
 0x108   : > { %v1436_v4 = vpop.f32.mrf.mxu1  ;;  %v438_v5 = vpop.f32.mrf.mxu0 }
 0x109   : > { %682 = vxpose.xlu0.b32.cont [7/16] (narrow) %v611_v56, 8  ;;  %672 = vst [vmem:[%s1391_s8 + $0x60] sm:$0xff] %v1436_v4  ;;  %497 = vst [vmem:[%s1375_s6 + $0x90] sm:$0xff] %v438_v5 }
 0x10a   : > { %v1442_v6 = vpop.f32.mrf.mxu1  ;;  %v440_v7 = vpop.f32.mrf.mxu0 }
 0x10b   : > { %675 = vst [vmem:[%s1391_s8 + $0x78] sm:$0xff] %v1442_v6  ;;  %498 = vst [vmem:[%s1375_s6 + $0x98] sm:$0xff] %v440_v7 }
 0x10c   : > { %v1454_v8 = vpop.f32.mrf.mxu1  ;;  %v444_v9 = vpop.f32.mrf.mxu0 }
 0x10d   : > { %683 = vxpose.xlu0.b32.cont [8/16] (narrow) %v980_v54, 8  ;;  %674 = vst [vmem:[%s1391_s8 + $0x70] sm:$0xff] %v1454_v8  ;;  %499 = vst [vmem:[%s1375_s6 + $0xa0] sm:$0xff] %v444_v9 }
 0x10e   : > { %v446_v10 = vpop.f32.mrf.mxu0 }
 0x10f   : > { %1068 = shalt.err (!%p1065_p3)
}
 0x110   : > { %s1069_s8 = scalar_lea.hbm %s1447_s14, 2048  ;;  %s1073_s11 = scalar_lea.hbm %s1570_s4, 6144 }
 0x111   : > { %p1070_p4 = scmp.ne.s32.totalorder %s1447_s14, %s1069_s8  ;;  %p1074_p9 = scmp.lt.s32.totalorder %s1447_s14, %s1570_s4 }
 0x112   : > { %p1075_p10 = scmp.lt.s32.totalorder %s1073_s11, %s1069_s8 }
 0x113   : > { %p1071_p7 = pnand %p1070_p4, %p1251_p5 }
 0x114   : > { %p1076_p11 = por %p1075_p10, %p1074_p9 }
 0x115   : > { %p1072_p8 = pneg %p1071_p7 }
 0x117   : > { %p1077_p12 = pnand %p1076_p11, %p1072_p8 }
 0x119   : > { %1080 = shalt.err (!%p1077_p12)
}
 0x11a   : > { %s1175_s25 = smov 128   ;;  %s1176_s7 = smov 8   ;;  %500 = vst [vmem:[%s1375_s6 + $0xa8] sm:$0xff] %v446_v10  ;;  %v450_v11 = vpop.f32.mrf.mxu0  ;;  %684 = vxpose.xlu0.b32.cont [9/16] (narrow) %v1414_v60, 8 }
 0x11b   : > { %1002 = dma.vmem_to_hbm [thread:$0]  (%p1251_p5), %s1452_s12, 2048, %s1447_s14, %s1461_s17, %s1175_s25, %s1175_s25, %s1176_s7  }
 0x11c   : > { %s1490_s8 = scalar_lea.hbm %s1569_s3, %s939_s15  ;;  %501 = vst [vmem:[%s1375_s6 + $0xb0] sm:$0xff] %v450_v11  ;;  %v452_v12 = vpop.f32.mrf.mxu0  ;;  %s710_s12 = scalar_lea.sflag [#allocation3], %s1372_s26 }
 0x11d   : > { %502 = vst [vmem:[%s1375_s6 + $0xb8] sm:$0xff] %v452_v12  ;;  %s1081_s14 = scalar_lea.vmem %s1494_s16, 4096  ;;  %s1177_s9 = smov [#allocation2]  }
 0x11e   : > { %p1082_p13 = scmp.ne.s32.totalorder %s1494_s16, %s1081_s14  ;;  %s1085_s15 = sshll.u32 %s1177_s9, 4  ;;  %s1086_s15 = int_to_ptr.vmem [resolvable:$false] %s1085_s15 }
 0x11f   : > { %s1087_s13 = scalar_lea.vmem %s1086_s15, 8192  ;;  %p1088_p2 = scmp.lt.s32.totalorder %s1494_s16, %s1086_s15 }
 0x120   : > { %p1083_p0 = pnand %p1082_p13, %p1251_p5  ;;  %p1089_p3 = scmp.lt.s32.totalorder %s1087_s13, %s1081_s14 }
 0x122   : > { %p1084_p1 = pneg %p1083_p0  ;;  %p1090_p4 = por %p1089_p3, %p1088_p2 }
 0x124   : > { %p1091_p7 = pnand %p1090_p4, %p1084_p1 }
 0x126   : > { %1094 = shalt.err (!%p1091_p7)
}
 0x127   : > { %s1095_s6 = scalar_lea.hbm %s1490_s8, 4096  ;;  %s1099_s25 = scalar_lea.hbm %s1569_s3, 12288 }
 0x128   : > { %p1096_p8 = scmp.ne.s32.totalorder %s1490_s8, %s1095_s6  ;;  %p1100_p11 = scmp.lt.s32.totalorder %s1490_s8, %s1569_s3 }
 0x129   : > { %p1101_p12 = scmp.lt.s32.totalorder %s1099_s25, %s1095_s6 }
 0x12a   : > { %p1097_p9 = pnand %p1096_p8, %p1251_p5 }
 0x12b   : > { %p1102_p13 = por %p1101_p12, %p1100_p11 }
 0x12c   : > { %p1098_p10 = pneg %p1097_p9 }
 0x12e   : > { %p1103_p0 = pnand %p1102_p13, %p1098_p10 }
 0x130   : > { %1106 = shalt.err (!%p1103_p0)
}
 0x131   : > { %s1178_s10 = smov 256   ;;  %s1179_s14 = smov 16   ;;  %685 = vxpose.xlu0.b32.cont [10/16] (narrow) %v1409_v58, 8 }
 0x132   : > { %1001 = dma.vmem_to_hbm [thread:$0]  (%p1251_p5), %s1494_s16, 4096, %s1490_s8, %s710_s12, %s1178_s10, %s1178_s10, %s1179_s14  }
 0x133   : > { %s892_s9 = sshll.u32 %s1372_s26, 3  ;;  %s935_s6 = sshll.u32 %s1232_s22, 7 }
 0x134   : > { %s236_s15 = scalar_lea.vmem [#allocation6], %s892_s9  ;;  %s764_s12 = scalar_lea.hbm %s1571_s5, %s935_s6 }
 0x135   : > { %686 = vxpose.xlu0.b32.cont [11/16] (narrow) %v1424_v0, 8  ;;  %s766_s13 = sshll.u32 %s236_s15, 4  ;;  %s1180_s30 = smov [#allocation6]   ;;  %s767_s13 = int_to_ptr.vmem [resolvable:$true] %s766_s13 }
 0x136   : > { %s1107_s11 = scalar_lea.vmem %s767_s13, 128  ;;  %s1111_s25 = sshll.u32 %s1180_s30, 4  ;;  %s1112_s25 = int_to_ptr.vmem [resolvable:$false] %s1111_s25 }
 0x137   : > { %p1108_p1 = scmp.ne.s32.totalorder %s767_s13, %s1107_s11  ;;  %s1113_s7 = scalar_lea.vmem %s1112_s25, 256 }
 0x138   : > { %p1114_p4 = scmp.lt.s32.totalorder %s767_s13, %s1112_s25  ;;  %p1115_p7 = scmp.lt.s32.totalorder %s1113_s7, %s1107_s11 }
 0x139   : > { %687 = vxpose.xlu0.b32.cont [12/16] (narrow) %v1419_v62, 8  ;;  %p1109_p2 = pnand %p1108_p1, %p1251_p5 }
 0x13a   : > { %p1116_p8 = por %p1115_p7, %p1114_p4 }
 0x13b   : > { %p1110_p3 = pneg %p1109_p2 }
 0x13d   : > { %688 = vxpose.xlu0.b32.cont [13/16] (narrow) %v1436_v4, 8  ;;  %p1117_p9 = pnand %p1116_p8, %p1110_p3 }
 0x141   : > { %689 = vxpose.xlu0.b32.cont [14/16] (narrow) %v1429_v2, 8 }
 0x145   : > { %690 = vxpose.xlu0.b32.cont [15/16] (narrow) %v1454_v8, 8 }
 0x149   : > { %691 = vxpose.xlu0.b32.end [16/16] (narrow) %v1442_v6, 8 }
 0x189   : > { %v692_v13 = vpop.trf.xlu0 }
 0x18a   : > { %708 = vst [vmem:[%s236_s15] sm:$0xff] %v692_v13 }
 0x18b   : > { %1120 = shalt.err (!%p1117_p9)
}
 0x18c   : > { %s1121_s22 = scalar_lea.hbm %s764_s12, 128  ;;  %s1125_s10 = scalar_lea.hbm %s1571_s5, 384 }
 0x18d   : > { %p1122_p10 = scmp.ne.s32.totalorder %s764_s12, %s1121_s22  ;;  %p1126_p13 = scmp.lt.s32.totalorder %s764_s12, %s1571_s5 }
 0x18e   : > { %p1127_p0 = scmp.lt.s32.totalorder %s1125_s10, %s1121_s22 }
 0x18f   : > { %p1123_p11 = pnand %p1122_p10, %p1251_p5 }
 0x190   : > { %p1128_p1 = por %p1127_p0, %p1126_p13 }
 0x191   : > { %p1124_p12 = pneg %p1123_p11 }
 0x193   : > { %p1129_p2 = pnand %p1128_p1, %p1124_p12 }
 0x195   : > { %1132 = shalt.err (!%p1129_p2)
}
 0x196   : > { %1003 = dma.vmem_to_hbm [thread:$0]  (%p1251_p5), %s767_s13, 128, %s764_s12, %s1461_s17  }
 0x197 PF: > { %p1017_p3 = scmp.ge.s32.totalorder %s1171_s21, 2  ;;  %s778_s15 = sand.u32 1, %s1159_s18  }
 0x198   : > { %s779_s6 = scalar_lea.sflag [#allocation3], %s778_s15 }
 0x199   : > { %p1008_p4 = pnand %p1017_p3, %p1255_p6 }
 0x19b   : > { %p1009_p7 = pneg %p1008_p4 }
 0x19d   : > { %1150 = dma.done.wait (%p1009_p7), %s779_s6, 4096  }
 0x19e   : > { %1152 = vsyncadd (%p1009_p7), %s779_s6, 4294963200  ;;  %s1575_s16 = sadd.s32 4294967294, %s1171_s21  }
 0x19f   : > { %s787_s8 = sand.u32 1, %s1575_s16  }
 0x1a0   : > { %s788_s11 = scalar_lea.sflag [#allocation5], %s787_s8 }
 0x1a1   : > { %1154 = dma.done.wait (%p1009_p7), %s788_s11, 2176  }
 0x1a2   : > { %1156 = vsyncadd (%p1009_p7), %s788_s11, 4294965120  ;;  %p19_p5 = scmp.ge.s32.totalorder %s1236_s24, 5   ;;  %s1576_s18 = smov %s1163_s19 }
 0x1a3   : > { %s1577_s19 = smov %s1167_s20  ;;  %s1578_s20 = smov %s1249_s27 }
 0x1a4   : > { %s1579_s21 = smov %s1236_s24  ;;  %21 = sbr.rel (!%p19_p5) target bundleno = 5 (0x5), region = 99 }
 0x1a9   :  { %802 = vsyncpa [#allocation3], 1 }
 0x1aa   :  { %804 = vsyncpa [#allocation3 + $0x1], 1 }
 0x1ab   :  { %805 = vsyncpa [#allocation5], 1 }
 0x1ac   :  { %807 = vsyncpa [#allocation5 + $0x1], 1 }

</bundles_post_ra>
